<compile_context>
chip_gen: v7x
topology: tpu7x:2x2x1
jax: 0.10.0
libtpu: 0.0.40
codegen_flags: <defaults>
</compile_context>

<pallas_src>
import functools

import jax
import jax.numpy as jnp
from jax.experimental import pallas as pl
from jax.experimental.pallas import tpu as pltpu


def _rce_kernel(x_ref, y_ref, o_ref, m_ref, d_ref, n_ref, *, actual_b, actual_c):
    i = pl.program_id(0)          # batch-tile index  ("parallel")
    k = pl.program_id(1)          # class-tile index  ("arbitrary", innermost)
    nk = pl.num_programs(1)

    @pl.when(k == 0)
    def _init():
        m_ref[...] = jnp.full_like(m_ref, -jnp.inf)
        d_ref[...] = jnp.zeros_like(d_ref)
        n_ref[...] = jnp.zeros_like(n_ref)

    x = x_ref[...].astype(jnp.float32)              # (TB, TC) upcast in VMEM
    y = y_ref[...]                                  # (TB, 1) int32 labels
    tb, tc = x.shape

    # Global column ids of this class tile; columns past the real C (edge
    # tiles read padded/stale lanes) are masked to -inf so exp() kills them.
    col = jax.lax.broadcasted_iota(jnp.int32, (tb, tc), 1) + k * tc
    x = jnp.where(col < actual_c, x, -jnp.inf)

    # Online softmax accumulation: one pass over the class axis.
    m_prev = m_ref[...]
    m_new = jnp.maximum(m_prev, jnp.max(x, axis=-1, keepdims=True))
    alpha = jnp.exp(m_prev - m_new)                 # rescale old partial sums
    p = jnp.exp(x - m_new)                          # (TB, TC); masked cols -> 0
    d_ref[...] = alpha * d_ref[...] + jnp.sum(p, axis=-1, keepdims=True)
    # Fused one-hot "gather" of the true-class term: a single select.
    n_ref[...] = alpha * n_ref[...] + jnp.sum(
        jnp.where(col == y, p, 0.0), axis=-1, keepdims=True)
    m_ref[...] = m_new

    @pl.when(k == nk - 1)
    def _finalize():
        d = d_ref[...]
        inv = pl.reciprocal(d, approx=True)         # EUP slot
        inv = inv * (2.0 - d * inv)                 # 1 Newton step -> ~f32 exact
        pt = n_ref[...] * inv                       # (TB, 1)
        row = jax.lax.broadcasted_iota(jnp.int32, (tb, 1), 0) + i * tb
        # Zero out rows past the real batch (edge batch tile / stale data).
        o_ref[...] = jnp.where(row < actual_b, 1.0 - pt, 0.0)


def reverse_cross_entropy(x, y, A=-4.0):
    """Pallas TPU implementation of ReverseCrossEntropy.forward(x, y)."""
    B, C = x.shape
    y2 = jnp.asarray(y).reshape(B, 1).astype(jnp.int32)

    # Tile sizes: legal under the (8,128) rule on every path
    # (either the full array dim or a multiple of 8 / 128).
    TB = B if B <= 256 else 256
    TC = C if C <= 2048 else 2048
    nb = pl.cdiv(B, TB)
    nc = pl.cdiv(C, TC)

    partials = pl.pallas_call(
        functools.partial(_rce_kernel, actual_b=B, actual_c=C),
        out_shape=jax.ShapeDtypeStruct((nb * TB, 1), jnp.float32),
        grid_spec=pltpu.PrefetchScalarGridSpec(
            num_scalar_prefetch=0,
            grid=(nb, nc),                                   # reduction axis last
            in_specs=[
                pl.BlockSpec((TB, TC), lambda i, k: (i, k)),  # logits, native dtype
                pl.BlockSpec((TB, 1), lambda i, k: (i, 0)),   # labels
            ],
            out_specs=pl.BlockSpec((TB, 1), lambda i, k: (i, 0)),
            scratch_shapes=[
                pltpu.VMEM((TB, 1), jnp.float32),   # running max
                pltpu.VMEM((TB, 1), jnp.float32),   # running softmax denom
                pltpu.VMEM((TB, 1), jnp.float32),   # running true-class numerator
            ],
        ),
        compiler_params=pltpu.CompilerParams(
            dimension_semantics=("parallel", "arbitrary"),
            vmem_limit_bytes=32 * 1024 * 1024,
        ),
    )(x, y2)

    # Tiny host-side reduction of the per-row partials; -A/B folded once.
    return (-float(A) / float(B)) * jnp.sum(partials)


# Pure-JAX reference (correctness check only).
def reverse_cross_entropy_ref(x, y, A=-4.0):
    probs = jax.nn.softmax(x.astype(jnp.float32), axis=-1)
    pt = jnp.take_along_axis(probs, y.reshape(-1, 1).astype(jnp.int32), axis=-1)[:, 0]
    return -A * jnp.mean(1.0 - pt)


if __name__ == "__main__":
    k1, k2, k3, k4 = jax.random.split(jax.random.PRNGKey(0), 4)
    fn = jax.jit(reverse_cross_entropy)

    # Small shape consistent with the module (batch=8, classes=32): grid (1,1).
    B, C = 8, 32
    x = jax.random.normal(k1, (B, C), jnp.float32)
    y = jax.random.randint(k2, (B,), 0, C, jnp.int32)
    loss = jax.block_until_ready(fn(x, y))
    assert loss.shape == (), loss.shape
    ref = reverse_cross_entropy_ref(x, y)
    assert jnp.allclose(loss, ref, atol=1e-3, rtol=1e-3), (loss, ref)

    # Larger, non-divisible shape: exercises batch/class tiling, online-softmax
    # accumulation across class tiles, and the edge-tile masking.
    B2, C2 = 300, 3000
    x2 = jax.random.normal(k3, (B2, C2), jnp.float32)
    y2 = jax.random.randint(k4, (B2,), 0, C2, jnp.int32)
    loss2 = jax.block_until_ready(fn(x2, y2))
    ref2 = reverse_cross_entropy_ref(x2, y2)
    assert jnp.allclose(loss2, ref2, atol=1e-3, rtol=1e-3), (loss2, ref2)

    # Native-bf16 logits path (no host-side cast, half the HBM read bytes).
    x2b = x2.astype(jnp.bfloat16)
    loss3 = jax.block_until_ready(fn(x2b, y2))
    ref3 = reverse_cross_entropy_ref(x2b, y2)
    assert jnp.allclose(loss3, ref3, atol=2e-3, rtol=2e-3), (loss3, ref3)

    # TODO(synk): torch-style out-of-range labels (e.g. ignore_index=-100) are
    # not specially handled; they contribute pt=0, matching the raw module spec.
    print("KERNEL_OK")
</pallas_src>

<mosaic_0001>
module attributes {stable_mosaic.version = 11 : i64} {
  func.func @_rce_kernel(%arg0: i32, %arg1: i32, %arg2: memref<8x32xf32, #tpu.memory_space<vmem>>, %arg3: memref<8x1xi32, #tpu.memory_space<vmem>>, %arg4: memref<8x1xf32, #tpu.memory_space<vmem>>, %arg5: memref<8x1xf32, #tpu.memory_space<vmem>>, %arg6: memref<8x1xf32, #tpu.memory_space<vmem>>, %arg7: memref<8x1xf32, #tpu.memory_space<vmem>>) attributes {dimension_semantics = [#tpu.dimension_semantics<parallel>, #tpu.dimension_semantics<arbitrary>], iteration_bounds = array<i64: 1, 1>, scalar_prefetch = 0 : i64, scratch_operands = 3 : i64, tpu.core_type = #tpu.core_type<tc>, window_params = [{transform_indices = @transform_0, window_bounds = array<i64: 8, 32>}, {transform_indices = @transform_1, window_bounds = array<i64: 8, 1>}, {transform_indices = @transform_2, window_bounds = array<i64: 8, 1>}]} {
    %c0_i32 = arith.constant 0 : i32
    %0 = arith.cmpi eq, %arg1, %c0_i32 : i32
    %1 = arith.extui %0 : i1 to i32
    %c0_i32_0 = arith.constant 0 : i32
    %2 = arith.cmpi ne, %1, %c0_i32_0 : i32
    scf.if %2 {
      %cst_23 = arith.constant 0xFF800000 : f32
      %42 = vector.broadcast %cst_23 : f32 to vector<8x1xf32>
      %c0_24 = arith.constant 0 : index
      %c0_25 = arith.constant 0 : index
      %43 = vector.load %arg5[%c0_24, %c0_25] : memref<8x1xf32, #tpu.memory_space<vmem>>, vector<8x1xf32>
      tpu.vector_store %arg5[%c0_24, %c0_25], %42 {strides = array<i32>} : memref<8x1xf32, #tpu.memory_space<vmem>>, vector<8x1xf32>,
      %cst_26 = arith.constant 0.000000e+00 : f32
      %44 = vector.broadcast %cst_26 : f32 to vector<8x1xf32>
      %c0_27 = arith.constant 0 : index
      %c0_28 = arith.constant 0 : index
      %45 = vector.load %arg6[%c0_27, %c0_28] : memref<8x1xf32, #tpu.memory_space<vmem>>, vector<8x1xf32>
      tpu.vector_store %arg6[%c0_27, %c0_28], %44 {strides = array<i32>} : memref<8x1xf32, #tpu.memory_space<vmem>>, vector<8x1xf32>,
      %cst_29 = arith.constant 0.000000e+00 : f32
      %46 = vector.broadcast %cst_29 : f32 to vector<8x1xf32>
      %c0_30 = arith.constant 0 : index
      %c0_31 = arith.constant 0 : index
      %47 = vector.load %arg7[%c0_30, %c0_31] : memref<8x1xf32, #tpu.memory_space<vmem>>, vector<8x1xf32>
      tpu.vector_store %arg7[%c0_30, %c0_31], %46 {strides = array<i32>} : memref<8x1xf32, #tpu.memory_space<vmem>>, vector<8x1xf32>,
    } else {
    }
    %c0 = arith.constant 0 : index
    %c0_1 = arith.constant 0 : index
    %3 = vector.load %arg2[%c0, %c0_1] : memref<8x32xf32, #tpu.memory_space<vmem>>, vector<8x32xf32>
    %c0_2 = arith.constant 0 : index
    %c0_3 = arith.constant 0 : index
    %4 = vector.load %arg3[%c0_2, %c0_3] : memref<8x1xi32, #tpu.memory_space<vmem>>, vector<8x1xi32>
    %5 = tpu.iota {dimensions = array<i32: 1>} : vector<8x32xi32>
    %c32_i32 = arith.constant 32 : i32
    %6 = arith.muli %arg1, %c32_i32 : i32
    %7 = vector.broadcast %6 : i32 to vector<8x32xi32>
    %8 = arith.addi %5, %7 : vector<8x32xi32>
    %c32_i32_4 = arith.constant 32 : i32
    %9 = vector.broadcast %c32_i32_4 : i32 to vector<8x32xi32>
    %10 = arith.cmpi slt, %8, %9 : vector<8x32xi32>
    %cst = arith.constant 0xFF800000 : f32
    %11 = vector.broadcast %cst : f32 to vector<8x32xf32>
    %12 = arith.select %10, %3, %11 : vector<8x32xi1>, vector<8x32xf32>
    %c0_5 = arith.constant 0 : index
    %c0_6 = arith.constant 0 : index
    %13 = vector.load %arg5[%c0_5, %c0_6] : memref<8x1xf32, #tpu.memory_space<vmem>>, vector<8x1xf32>
    %cst_7 = arith.constant dense<0xFF800000> : vector<8xf32>
    %14 = vector.multi_reduction <maximumf>, %12, %cst_7 [1] : vector<8x32xf32> to vector<8xf32>
    %15 = vector.shape_cast %14 : vector<8xf32> to vector<8x1xf32>
    %16 = arith.maximumf %13, %15 : vector<8x1xf32>
    %17 = arith.subf %13, %16 : vector<8x1xf32>
    %18 = math.exp %17 : vector<8x1xf32>
    %19 = vector.broadcast %16 : vector<8x1xf32> to vector<8x32xf32>
    %20 = arith.subf %12, %19 : vector<8x32xf32>
    %21 = math.exp %20 : vector<8x32xf32>
    %c0_8 = arith.constant 0 : index
    %c0_9 = arith.constant 0 : index
    %22 = vector.load %arg6[%c0_8, %c0_9] : memref<8x1xf32, #tpu.memory_space<vmem>>, vector<8x1xf32>
    %23 = arith.mulf %18, %22 : vector<8x1xf32>
    %cst_10 = arith.constant dense<0.000000e+00> : vector<8xf32>
    %24 = vector.multi_reduction <add>, %21, %cst_10 [1] : vector<8x32xf32> to vector<8xf32>
    %25 = vector.shape_cast %24 : vector<8xf32> to vector<8x1xf32>
    %26 = arith.addf %23, %25 : vector<8x1xf32>
    %c0_11 = arith.constant 0 : index
    %c0_12 = arith.constant 0 : index
    %27 = vector.load %arg6[%c0_11, %c0_12] : memref<8x1xf32, #tpu.memory_space<vmem>>, vector<8x1xf32>
    tpu.vector_store %arg6[%c0_11, %c0_12], %26 {strides = array<i32>} : memref<8x1xf32, #tpu.memory_space<vmem>>, vector<8x1xf32>,
    %c0_13 = arith.constant 0 : index
    %c0_14 = arith.constant 0 : index
    %28 = vector.load %arg7[%c0_13, %c0_14] : memref<8x1xf32, #tpu.memory_space<vmem>>, vector<8x1xf32>
    %29 = arith.mulf %18, %28 : vector<8x1xf32>
    %30 = vector.broadcast %4 : vector<8x1xi32> to vector<8x32xi32>
    %31 = arith.cmpi eq, %8, %30 : vector<8x32xi32>
    %cst_15 = arith.constant 0.000000e+00 : f32
    %32 = vector.broadcast %cst_15 : f32 to vector<8x32xf32>
    %33 = arith.select %31, %21, %32 : vector<8x32xi1>, vector<8x32xf32>
    %cst_16 = arith.constant dense<0.000000e+00> : vector<8xf32>
    %34 = vector.multi_reduction <add>, %33, %cst_16 [1] : vector<8x32xf32> to vector<8xf32>
    %35 = vector.shape_cast %34 : vector<8xf32> to vector<8x1xf32>
    %36 = arith.addf %29, %35 : vector<8x1xf32>
    %c0_17 = arith.constant 0 : index
    %c0_18 = arith.constant 0 : index
    %37 = vector.load %arg7[%c0_17, %c0_18] : memref<8x1xf32, #tpu.memory_space<vmem>>, vector<8x1xf32>
    tpu.vector_store %arg7[%c0_17, %c0_18], %36 {strides = array<i32>} : memref<8x1xf32, #tpu.memory_space<vmem>>, vector<8x1xf32>,
    %c0_19 = arith.constant 0 : index
    %c0_20 = arith.constant 0 : index
    %38 = vector.load %arg5[%c0_19, %c0_20] : memref<8x1xf32, #tpu.memory_space<vmem>>, vector<8x1xf32>
    tpu.vector_store %arg5[%c0_19, %c0_20], %16 {strides = array<i32>} : memref<8x1xf32, #tpu.memory_space<vmem>>, vector<8x1xf32>,
    %c0_i32_21 = arith.constant 0 : i32
    %39 = arith.cmpi eq, %arg1, %c0_i32_21 : i32
    %40 = arith.extui %39 : i1 to i32
    %c0_i32_22 = arith.constant 0 : i32
    %41 = arith.cmpi ne, %40, %c0_i32_22 : i32
    scf.if %41 {
      %c0_23 = arith.constant 0 : index
      %c0_24 = arith.constant 0 : index
      %42 = vector.load %arg6[%c0_23, %c0_24] : memref<8x1xf32, #tpu.memory_space<vmem>>, vector<8x1xf32>
      %43 = tpu.reciprocal %42 {approx = true} : vector<8x1xf32> -> vector<8x1xf32>
      %44 = arith.mulf %42, %43 : vector<8x1xf32>
      %cst_25 = arith.constant 2.000000e+00 : f32
      %45 = vector.broadcast %cst_25 : f32 to vector<8x1xf32>
      %46 = arith.subf %45, %44 : vector<8x1xf32>
      %47 = arith.mulf %43, %46 : vector<8x1xf32>
      %c0_26 = arith.constant 0 : index
      %c0_27 = arith.constant 0 : index
      %48 = vector.load %arg7[%c0_26, %c0_27] : memref<8x1xf32, #tpu.memory_space<vmem>>, vector<8x1xf32>
      %49 = arith.mulf %48, %47 : vector<8x1xf32>
      %50 = tpu.iota {dimensions = array<i32: 0>} : vector<8x1xi32>
      %c8_i32 = arith.constant 8 : i32
      %51 = arith.muli %arg0, %c8_i32 : i32
      %52 = vector.broadcast %51 : i32 to vector<8x1xi32>
      %53 = arith.addi %50, %52 : vector<8x1xi32>
      %c8_i32_28 = arith.constant 8 : i32
      %54 = vector.broadcast %c8_i32_28 : i32 to vector<8x1xi32>
      %55 = arith.cmpi slt, %53, %54 : vector<8x1xi32>
      %cst_29 = arith.constant 1.000000e+00 : f32
      %56 = vector.broadcast %cst_29 : f32 to vector<8x1xf32>
      %57 = arith.subf %56, %49 : vector<8x1xf32>
      %cst_30 = arith.constant 0.000000e+00 : f32
      %58 = vector.broadcast %cst_30 : f32 to vector<8x1xf32>
      %59 = arith.select %55, %57, %58 : vector<8x1xi1>, vector<8x1xf32>
      %c0_31 = arith.constant 0 : index
      %c0_32 = arith.constant 0 : index
      %60 = vector.load %arg4[%c0_31, %c0_32] : memref<8x1xf32, #tpu.memory_space<vmem>>, vector<8x1xf32>
      tpu.vector_store %arg4[%c0_31, %c0_32], %59 {strides = array<i32>} : memref<8x1xf32, #tpu.memory_space<vmem>>, vector<8x1xf32>,
    } else {
    }
    return
  }
  func.func @transform_0(%arg0: i32, %arg1: i32) -> (i32, i32) {
    %c0_i32 = arith.constant 0 : i32
    return %arg0, %arg1 : i32, i32
  }
  func.func @transform_1(%arg0: i32, %arg1: i32) -> (i32, i32) {
    %c0_i32 = arith.constant 0 : i32
    %c0_i32_0 = arith.constant 0 : i32
    return %arg0, %c0_i32 : i32, i32
  }
  func.func @transform_2(%arg0: i32, %arg1: i32) -> (i32, i32) {
    %c0_i32 = arith.constant 0 : i32
    %c0_i32_0 = arith.constant 0 : i32
    return %arg0, %c0_i32 : i32, i32
  }
}

</mosaic_0001>

<bundles_post_ra>
// kernel: reverse_cross_entropy.1
= control target key start
LH: loop header
LB: loop body
LE: loop exit
PB: predicated region body
PF: predicated region fallthrough
CT: control target
= control target key end

     0   :  { %v21_v0 = vlaneseq  ;;  %vm15_vm0 = vcmask 7168   ;;  %v100_v1 = vmov -inf   ;;  %vm29_vm1 = vcmask 261120   ;;  %s137_s0 = inlined_call_operand.vmem [shape: f32[8,32], index: 0, kind: input, shape index: {}]   ;;  %s138_s1 = inlined_call_operand.vmem [shape: s32[8,1], index: 1, kind: input, shape index: {}]   ;;  %s139_s2 = inlined_call_operand.vmem [shape: f32[8,1], index: 2, kind: output, shape index: {}]  }
   0x1   :  { %16 = vst.msk [vmem:[#allocation2] sm:$0xff] %vm15_vm0, %v100_v1  ;;  %v19_v2 = vld [vmem:[%s137_s0] sm:$0xff]  ;;  %v101_v6 = vmov 0   ;;  %v102_v8 = vmov 0.0  }
   0x2   :  { %v22_v3 = vand.u32 127, %v21_v0  ;;  %92 = vset.pattern.permute.xlu0 %v101_v6  ;;  %93 = vset.pattern.permute.xlu1 %v101_v6  ;;  %v20_v7 = vld [vmem:[%s138_s1] sm:$0xff]  ;;  %17 = vst.msk [vmem:[#allocation3] sm:$0xff] %vm15_vm0, %v102_v8  ;;  %18 = vst.msk [vmem:[#allocation4] sm:$0xff] %vm15_vm0, %v102_v8 }
   0x3   :  { %56 = vperm.xlu1 %93, %v20_v7  }
   0x4   :  { %vm26_vm2 = vcmp.lt.s32.totalorder %v22_v3, 32 }
   0x5   :  { %v27_v4 = vsel %vm26_vm2, %v19_v2, -inf }
   0x6   :  { %v30_v5 = vsel %vm29_vm1, %v27_v4, -inf }
   0x7   :  { %31 = vmax.xlane.f32.xlu0 %v30_v5 }
   0x8   :  { %v28_v9 = vld [vmem:[#allocation2] sm:$0xff] }
   0x9   :  { %v45_v23 = vld [vmem:[#allocation3] sm:$0xff]  ;;  %v53_v26 = vld [vmem:[#allocation4] sm:$0xff] }
  0x82   :  { %v57_v16 = vpop.permute.xlu1 %56 }
  0x83   :  { %vm58_vm3 = vcmp.eq.s32.totalorder %v22_v3, %v57_v16 }
  0x94   :  { %v32_v10 = vpop.xlane.xlu0 %31 }
  0x95   :  { %v33_v11 = vmax.f32 %v28_v9, %v32_v10 }
  0x97   :  { %v34_v12 = vsub.f32 %v28_v9, %v33_v11  ;;  %65 = vst.msk [vmem:[#allocation2] sm:$0xff] %vm15_vm0, %v33_v11  ;;  %39 = vperm.xlu0 %92, %v33_v11  }
  0x99   :  { %v35_v21 = vmul.f32 1.442695, %v34_v12 }
 0x116   :  { %v40_v13 = vpop.permute.xlu0 %39 }
 0x117   :  { %v42_v14 = vsub.f32 %v27_v4, %v40_v13 }
 0x119   :  { %v43_v15 = vmul.f32 1.442695, %v42_v14 }
 0x11b   :  { %94 = vpow2.f32 %v43_v15 }
 0x11c   :  { %96 = vpow2.f32 %v35_v21 }
 0x125   :  { %v95_v17 = vpop.eup %94 }
 0x126   :  { %v47_v18 = vsel %vm29_vm1, %v95_v17, 0.0  ;;  %v59_v19 = vsel %vm58_vm3, %v95_v17, 0.0  ;;  %v97_v22 = vpop.eup %96 }
 0x127   :  { %48 = vadd.xlane.f32.xlu1 %v47_v18  ;;  %v60_v20 = vsel %vm29_vm1, %v59_v19, 0.0  ;;  %v46_v24 = vmul.f32 %v97_v22, %v45_v23  ;;  %v54_v28 = vmul.f32 %v97_v22, %v53_v26 }
 0x12b   :  { %61 = vadd.xlane.f32.xlu1 %v60_v20 }
 0x1b4   :  { %v49_v25 = vpop.xlane.xlu1 %48 }
 0x1b5   :  { %v50_v27 = vadd.f32 %v49_v25, %v46_v24 }
 0x1b7   :  { %52 = vst.msk [vmem:[#allocation3] sm:$0xff] %vm15_vm0, %v50_v27 }
 0x1b8   :  { %v62_v29 = vpop.xlane.xlu1 %61 }
 0x1b9   :  { %v63_v30 = vadd.f32 %v62_v29, %v54_v28 }
 0x1bb   :  { %64 = vst.msk [vmem:[#allocation4] sm:$0xff] %vm15_vm0, %v63_v30 }
 0x1be   :  { %v69_v31 = vld [vmem:[#allocation3] sm:$0xff] }
 0x1bf   :  { %98 = vrcp.f32 %v69_v31 }
 0x1c2   :  { %v74_v36 = vld [vmem:[#allocation4] sm:$0xff] }
 0x1c9   :  { %v99_v32 = vpop.eup %98 }
 0x1ca   :  { %v71_v33 = vmul.f32 %v99_v32, %v69_v31 }
 0x1cc   :  { %v72_v34 = vsub.f32 2.0, %v71_v33 }
 0x1ce   :  { %v73_v35 = vmul.f32 %v99_v32, %v72_v34 }
 0x1d0   :  { %v75_v37 = vmul.f32 %v74_v36, %v73_v35 }
 0x1d2   :  { %v82_v38 = vsub.f32 1.0, %v75_v37 }
 0x1d4   :  { %84 = vst.msk [vmem:[%s139_s2] sm:$0xff] %vm15_vm0, %v82_v38 }

</bundles_post_ra>
